<compile_context>
chip_gen: v7x
topology: tpu7x:2x2x1
jax: 0.10.0
libtpu: 0.0.40
codegen_flags: <defaults>
</compile_context>

<pallas_src>
import functools

import jax
import jax.numpy as jnp
from jax.experimental import pallas as pl
from jax.experimental.pallas import tpu as pltpu


# ---------------------------------------------------------------------------
# helpers
# ---------------------------------------------------------------------------
def _round_up(a, b):
    return (a + b - 1) // b * b


def _pick_h_tile(H, th_default):
    """Largest multiple of 128 that divides H and is <= th_default, else H."""
    if H % 128 == 0:
        th = (min(th_default, H) // 128) * 128
        while th >= 128 and H % th != 0:
            th -= 128
        if th >= 128 and H % th == 0:
            return th
    return H


def _tpu_config():
    """(tm_default, th_default, physical VMEM bytes) for the local TPU generation."""
    kind = ""
    try:
        kind = jax.devices()[0].device_kind.lower()
    except Exception:
        pass
    vmem_cap = None
    try:
        vmem_cap = int(pltpu.get_tpu_info().vmem_capacity_bytes)
    except Exception:
        vmem_cap = None
    if "v7" in kind:
        # 64 MiB VMEM per TC, 2 TCs share ~3.2 TB/s HBM -> need tm >= ~512.
        return 512, 256, vmem_cap or 64 * 2**20
    if "v5 lite" in kind or "v5e" in kind or "v5lite" in kind:
        # ~240 flops/byte needed: tm=256 already MXU-bound; big th = fewer steps.
        return 256, 1024, vmem_cap or 128 * 2**20
    if "v6" in kind:
        # ~560 flops/byte needed -> tm=1024; fits in 128 MiB with th=512.
        return 1024, 512, vmem_cap or 128 * 2**20
    # Unknown generation: conservative (assume 64 MiB VMEM).
    return 512, 512, vmem_cap or 64 * 2**20


def _vmem_need(tm, th, D):
    """Rough VMEM footprint of one pipelined grid step."""
    inputs = 2 * (tm * D + 3 * D * th) * 2   # double-buffered bf16 x + w13 + w2
    outputs = 2 * tm * D * 2                 # double-buffered bf16 output
    scratch = tm * D * 4                     # f32 accumulator
    internal = 16 * tm * th                  # (tm,2*th) f32 h13 + f32 act + bf16 act
    return inputs + outputs + scratch + internal


# ---------------------------------------------------------------------------
# Pallas kernel: grouped expert FFN (SwiGLU), tiled over rows and H
# ---------------------------------------------------------------------------
def moe_ffn_kernel(tile_group_ref, x_ref, w13_ref, w2_ref, o_ref, acc_ref):
    """One (row-tile, H-tile) grid step.

    x_ref   : (tm, D)      bf16  rows of the expert-grouped token matrix
    w13_ref : (D, 2*th)    bf16  [w1 tile | w3 tile] of the expert for this row tile
    w2_ref  : (th, D)      bf16
    o_ref   : (tm, D)      bf16  per-row expert output (routing weight applied later)
    acc_ref : (tm, D)      f32   VMEM accumulator over the H (reduction) axis
    """
    hi = pl.program_id(1)

    @pl.when(hi == 0)
    def _init():
        acc_ref[...] = jnp.zeros_like(acc_ref)

    th = w13_ref.shape[-1] // 2
    x = x_ref[...]                                                       # (tm, D) bf16
    # Single fused matmul for w1|w3; split is a static lane slice (th % 128 == 0
    # for real shapes, so it is free).
    h13 = jnp.dot(x, w13_ref[...], preferred_element_type=jnp.float32)   # (tm, 2*th)
    h1 = h13[:, :th]
    h3 = h13[:, th:]
    # SwiGLU gate in f32 (sigmoid goes to the EUP slot, hidden under MXU work).
    act = (h1 * jax.nn.sigmoid(h1)) * h3
    acc_ref[...] += jnp.dot(act.astype(w2_ref.dtype), w2_ref[...],
                            preferred_element_type=jnp.float32)          # (tm, D)

    @pl.when(hi == pl.num_programs(1) - 1)
    def _store():
        o_ref[...] = acc_ref[...].astype(o_ref.dtype)


# ---------------------------------------------------------------------------
# Wrapper
# ---------------------------------------------------------------------------
def moe_forward(x, gate_w, w1, w3, w2, num_experts_per_tok, *, tm=None, th=None):
    """x: (..., D); gate_w: (D, E); w1/w3: (E, D, H); w2: (E, H, D)."""
    orig_shape = x.shape
    D = x.shape[-1]
    xt = x.reshape(-1, D).astype(jnp.float32)
    T = xt.shape[0]
    E = gate_w.shape[-1]
    H = w1.shape[-1]
    K = num_experts_per_tok

    # ---- router (tiny; left to XLA so it fuses with top_k / softmax) ----
    scores = jnp.dot(xt, gate_w.astype(jnp.float32))          # (T, E)
    top_vals, top_idx = jax.lax.top_k(scores, K)              # (T, K)
    top_w = jax.nn.softmax(top_vals, axis=-1)                 # (T, K)

    # ---- tile sizes (generation-dependent; shrink to fit VMEM, th first) ----
    tm_default, th_default, vmem_cap = _tpu_config()
    tm = tm_default if tm is None else tm
    th = th_default if th is None else th

    S = T * K
    min_tm = 128                                  # never drop to MXU-starving tiles
    tm = max(min_tm, min(tm, _round_up(max(S // E, 1), min_tm)))
    th = _pick_h_tile(H, th)

    cap = int(vmem_cap * 0.85)                    # leave headroom for Mosaic internals
    while _vmem_need(tm, th, D) > cap and th >= 256 and H % (th // 2) == 0:
        th //= 2
    while _vmem_need(tm, th, D) > cap and tm > min_tm:
        tm = max(min_tm, tm // 2)

    G = _round_up(S + E * (tm - 1), tm)           # static upper bound on grouped rows
    num_row_tiles = G // tm
    nh = H // th

    # ---- group (token, expert) slots by expert, pad each group to tm rows ----
    flat_expert = top_idx.reshape(S).astype(jnp.int32)                   # (S,)
    flat_token = jnp.repeat(jnp.arange(T, dtype=jnp.int32), K)           # (S,)
    flat_weight = top_w.reshape(S)

    order = jnp.argsort(flat_expert)
    sorted_expert = flat_expert[order]
    sorted_token = flat_token[order]
    sorted_weight = flat_weight[order]

    counts = jnp.zeros((E,), jnp.int32).at[flat_expert].add(1)
    group_start = jnp.cumsum(counts) - counts
    padded_counts = ((counts + tm - 1) // tm) * tm
    padded_start = jnp.cumsum(padded_counts) - padded_counts
    padded_end = jnp.cumsum(padded_counts)

    rank = jnp.arange(S, dtype=jnp.int32) - group_start[sorted_expert]
    dest = padded_start[sorted_expert] + rank                            # unique rows

    row_token = jnp.zeros((G,), jnp.int32).at[dest].set(sorted_token)
    row_weight = jnp.zeros((G,), jnp.float32).at[dest].set(sorted_weight)

    # expert id per row tile (groups are tm-aligned => exactly one expert per tile)
    tile_start = jnp.arange(num_row_tiles, dtype=jnp.int32) * tm
    tile_group = jnp.sum(
        (tile_start[:, None] >= padded_end[None, :]).astype(jnp.int32), axis=1)
    tile_group = jnp.minimum(tile_group, E - 1).astype(jnp.int32)

    # ---- bf16 operands for the MXU (f32 accumulation inside the kernel) ----
    xg = xt.astype(jnp.bfloat16)[row_token]                   # (G, D) gather
    # Pack w1|w3 so the hk-th lane block of size 2*th is [w1 tile hk | w3 tile hk].
    # TODO(synk): in a real model, pre-pack w13 once at weight-load time.
    w13 = jnp.concatenate(
        [w1.astype(jnp.bfloat16).reshape(E, D, nh, th),
         w3.astype(jnp.bfloat16).reshape(E, D, nh, th)],
        axis=-1).reshape(E, D, 2 * H)
    w2b = w2.astype(jnp.bfloat16)

    # ---- VMEM limit (never above physical VMEM) / cost hints ----
    need = _vmem_need(tm, th, D)
    vmem_limit = int(min(vmem_cap - 8 * 2**20,
                         max(32 * 2**20, need + 8 * 2**20)))
    cost = pl.CostEstimate(
        flops=6 * G * D * H,
        transcendentals=G * H,
        bytes_accessed=G * D * 2 + num_row_tiles * 3 * D * H * 2 + G * D * 2,
    )

    # ---- index maps (serpentine the H axis so adjacent row tiles with the
    #      same expert reuse the boundary weight tile) ----
    def x_map(r, hk, tg):
        return (r, 0)

    def o_map(r, hk, tg):
        return (r, 0)

    def w13_map(r, hk, tg):
        hs = jnp.where(r % 2 == 0, hk, nh - 1 - hk)
        return (tg[r], 0, hs)

    def w2_map(r, hk, tg):
        hs = jnp.where(r % 2 == 0, hk, nh - 1 - hk)
        return (tg[r], hs, 0)

    yg = pl.pallas_call(
        moe_ffn_kernel,
        out_shape=jax.ShapeDtypeStruct((G, D), jnp.bfloat16),
        grid_spec=pltpu.PrefetchScalarGridSpec(
            num_scalar_prefetch=1,
            grid=(num_row_tiles, nh),
            in_specs=[
                pl.BlockSpec((tm, D), x_map),                 # grouped x rows
                pl.BlockSpec((None, D, 2 * th), w13_map),     # packed w1|w3
                pl.BlockSpec((None, th, D), w2_map),          # w2
            ],
            out_specs=pl.BlockSpec((tm, D), o_map),
            scratch_shapes=[pltpu.VMEM((tm, D), jnp.float32)],
        ),
        compiler_params=pltpu.CompilerParams(
            dimension_semantics=("parallel", "arbitrary"),
            vmem_limit_bytes=vmem_limit,
        ),
        cost_estimate=cost,
    )(tile_group, xg, w13, w2b)

    # ---- weighted combine back to tokens (XLA fuses multiply into scatter-add);
    #      padded rows carry weight 0 so they contribute exact zeros ----
    out = jnp.zeros((T, D), jnp.float32).at[row_token].add(
        yg.astype(jnp.float32) * row_weight[:, None])
    return out.reshape(orig_shape).astype(x.dtype)


# ---------------------------------------------------------------------------
# Pure-JAX f32 reference (mirrors the PyTorch forward) for a correctness check
# ---------------------------------------------------------------------------
def moe_reference(x, gate_w, w1, w3, w2, num_experts_per_tok):
    xt = x.reshape(-1, x.shape[-1]).astype(jnp.float32)
    E = gate_w.shape[-1]
    scores = xt @ gate_w
    top_vals, top_idx = jax.lax.top_k(scores, num_experts_per_tok)
    top_w = jax.nn.softmax(top_vals, axis=-1)
    ys = jnp.stack([(jax.nn.silu(xt @ w1[e]) * (xt @ w3[e])) @ w2[e]
                    for e in range(E)])                                  # (E, T, D)
    gathered = ys[top_idx, jnp.arange(xt.shape[0])[:, None]]             # (T, K, D)
    out = jnp.sum(gathered * top_w[..., None], axis=1)                   # (T, D)
    return out.reshape(x.shape)


# ---------------------------------------------------------------------------
if __name__ == "__main__":
    # Small, module-consistent shapes.
    batch, seq = 2, 8
    dim, hidden_dim = 32, 64
    num_experts, num_experts_per_tok = 4, 2

    key = jax.random.PRNGKey(0)
    k_x, k_g, k_w1, k_w2, k_w3 = jax.random.split(key, 5)

    x = jax.random.normal(k_x, (batch, seq, dim), dtype=jnp.float32)

    scale = 0.05
    gate_w = scale * jax.random.normal(k_g, (dim, num_experts), dtype=jnp.float32)
    w1 = scale * jax.random.normal(k_w1, (num_experts, dim, hidden_dim), dtype=jnp.float32)
    w3 = scale * jax.random.normal(k_w3, (num_experts, dim, hidden_dim), dtype=jnp.float32)
    w2 = scale * jax.random.normal(k_w2, (num_experts, hidden_dim, dim), dtype=jnp.float32)

    fwd = jax.jit(functools.partial(moe_forward,
                                    num_experts_per_tok=num_experts_per_tok))
    out = jax.block_until_ready(fwd(x, gate_w, w1, w3, w2))

    ref = moe_reference(x, gate_w, w1, w3, w2, num_experts_per_tok)
    assert out.shape == x.shape
    # bf16 MXU operands + bf16 kernel output vs. pure-f32 reference tolerance.
    assert jnp.allclose(out, ref, atol=1e-2, rtol=5e-2), "mismatch vs reference"

    print("KERNEL_OK")
</pallas_src>

<mosaic_0001>
module attributes {stable_mosaic.version = 11 : i64} {
  func.func private @main(%arg0: i32) attributes {dimension_semantics = [#tpu.dimension_semantics<core_parallel>], iteration_bounds = array<i64: 2>, tpu.core_type = #tpu.core_type<sc_scalar_subcore>, window_params = []} {
    return
  }
}

module attributes {stable_mosaic.version = 11 : i64} {
  func.func private @main(%arg0: i32) attributes {dimension_semantics = [#tpu.dimension_semantics<core_parallel>], iteration_bounds = array<i64: 2>, tpu.core_type = #tpu.core_type<sc_scalar_subcore>, window_params = []} {
    return
  }
}

module attributes {stable_mosaic.version = 11 : i64} {
  func.func @moe_ffn_kernel(%arg0: i32, %arg1: i32, %arg2: memref<5xi32, #tpu.memory_space<smem>>, %arg3: memref<128x32xbf16, #tpu.memory_space<vmem>>, %arg4: memref<1x32x128xbf16, #tpu.memory_space<vmem>>, %arg5: memref<1x64x32xbf16, #tpu.memory_space<vmem>>, %arg6: memref<128x32xbf16, #tpu.memory_space<vmem>>, %arg7: memref<128x32xf32, #tpu.memory_space<vmem>>) attributes {dimension_semantics = [#tpu.dimension_semantics<parallel>, #tpu.dimension_semantics<arbitrary>], iteration_bounds = array<i64: 5, 1>, scalar_prefetch = 1 : i64, scratch_operands = 1 : i64, tpu.core_type = #tpu.core_type<tc>, window_params = [{transform_indices = @transform_0, window_bounds = array<i64: 128, 32>}, {transform_indices = @transform_1, window_bounds = array<i64: 1, 32, 128>}, {transform_indices = @transform_2, window_bounds = array<i64: 1, 64, 32>}, {transform_indices = @transform_3, window_bounds = array<i64: 128, 32>}]} {
    %c0_i32 = arith.constant 0 : i32
    %0 = arith.cmpi eq, %arg1, %c0_i32 : i32
    %1 = arith.extui %0 : i1 to i32
    %c0_i32_0 = arith.constant 0 : i32
    %2 = arith.cmpi ne, %1, %c0_i32_0 : i32
    scf.if %2 {
      %cst_16 = arith.constant 0.000000e+00 : f32
      %26 = vector.broadcast %cst_16 : f32 to vector<128x32xf32>
      %c0_17 = arith.constant 0 : index
      %c0_18 = arith.constant 0 : index
      %27 = vector.load %arg7[%c0_17, %c0_18] : memref<128x32xf32, #tpu.memory_space<vmem>>, vector<128x32xf32>
      tpu.vector_store %arg7[%c0_17, %c0_18], %26 {strides = array<i32>} : memref<128x32xf32, #tpu.memory_space<vmem>>, vector<128x32xf32>,
    } else {
    }
    %c0 = arith.constant 0 : index
    %c0_1 = arith.constant 0 : index
    %3 = vector.load %arg3[%c0, %c0_1] : memref<128x32xbf16, #tpu.memory_space<vmem>>, vector<128x32xbf16>
    %c0_2 = arith.constant 0 : index
    %c0_3 = arith.constant 0 : index
    %c0_4 = arith.constant 0 : index
    %4 = vector.load %arg4[%c0_2, %c0_3, %c0_4] : memref<1x32x128xbf16, #tpu.memory_space<vmem>>, vector<1x32x128xbf16>
    %5 = vector.shape_cast %4 : vector<1x32x128xbf16> to vector<32x128xbf16>
    %cst = arith.constant dense<0.000000e+00> : vector<128x128xf32>
    %6 = tpu.matmul %3, %5, %cst {dimension_numbers = #tpu.dot_dimension_numbers<[1], [0], [0], [1], [0, 0, 1, 1], [], []>} : vector<128x32xbf16>, vector<32x128xbf16>, vector<128x128xf32> -> vector<128x128xf32>
    %7 = vector.extract_strided_slice %6 {offsets = [0, 0], sizes = [128, 64], strides = [1, 1]} : vector<128x128xf32> to vector<128x64xf32>
    %8 = vector.extract_strided_slice %6 {offsets = [0, 64], sizes = [128, 64], strides = [1, 1]} : vector<128x128xf32> to vector<128x64xf32>
    %9 = arith.negf %7 : vector<128x64xf32>
    %10 = math.exp %9 : vector<128x64xf32>
    %cst_5 = arith.constant 1.000000e+00 : f32
    %11 = vector.broadcast %cst_5 : f32 to vector<128x64xf32>
    %12 = arith.addf %11, %10 : vector<128x64xf32>
    %13 = arith.divf %11, %12 : vector<128x64xf32>
    %14 = arith.mulf %7, %13 : vector<128x64xf32>
    %15 = arith.mulf %14, %8 : vector<128x64xf32>
    %c0_6 = arith.constant 0 : index
    %c0_7 = arith.constant 0 : index
    %16 = vector.load %arg7[%c0_6, %c0_7] : memref<128x32xf32, #tpu.memory_space<vmem>>, vector<128x32xf32>
    %17 = arith.truncf %15 : vector<128x64xf32> to vector<128x64xbf16>
    %c0_8 = arith.constant 0 : index
    %c0_9 = arith.constant 0 : index
    %c0_10 = arith.constant 0 : index
    %18 = vector.load %arg5[%c0_8, %c0_9, %c0_10] : memref<1x64x32xbf16, #tpu.memory_space<vmem>>, vector<1x64x32xbf16>
    %19 = vector.shape_cast %18 : vector<1x64x32xbf16> to vector<64x32xbf16>
    %cst_11 = arith.constant dense<0.000000e+00> : vector<128x32xf32>
    %20 = tpu.matmul %17, %19, %cst_11 {dimension_numbers = #tpu.dot_dimension_numbers<[1], [0], [0], [1], [0, 0, 1, 1], [], []>} : vector<128x64xbf16>, vector<64x32xbf16>, vector<128x32xf32> -> vector<128x32xf32>
    %21 = arith.addf %16, %20 : vector<128x32xf32>
    %c0_12 = arith.constant 0 : index
    %c0_13 = arith.constant 0 : index
    %22 = vector.load %arg7[%c0_12, %c0_13] : memref<128x32xf32, #tpu.memory_space<vmem>>, vector<128x32xf32>
    tpu.vector_store %arg7[%c0_12, %c0_13], %21 {strides = array<i32>} : memref<128x32xf32, #tpu.memory_space<vmem>>, vector<128x32xf32>,
    %c0_i32_14 = arith.constant 0 : i32
    %23 = arith.cmpi eq, %arg1, %c0_i32_14 : i32
    %24 = arith.extui %23 : i1 to i32
    %c0_i32_15 = arith.constant 0 : i32
    %25 = arith.cmpi ne, %24, %c0_i32_15 : i32
    scf.if %25 {
      %c0_16 = arith.constant 0 : index
      %c0_17 = arith.constant 0 : index
      %26 = vector.load %arg7[%c0_16, %c0_17] : memref<128x32xf32, #tpu.memory_space<vmem>>, vector<128x32xf32>
      %27 = arith.truncf %26 : vector<128x32xf32> to vector<128x32xbf16>
      %c0_18 = arith.constant 0 : index
      %c0_19 = arith.constant 0 : index
      %28 = vector.load %arg6[%c0_18, %c0_19] : memref<128x32xbf16, #tpu.memory_space<vmem>>, vector<128x32xbf16>
      tpu.vector_store %arg6[%c0_18, %c0_19], %27 {strides = array<i32>} : memref<128x32xbf16, #tpu.memory_space<vmem>>, vector<128x32xbf16>,
    } else {
    }
    return
  }
  func.func @transform_0(%arg0: i32, %arg1: i32, %arg2: memref<5xi32, #tpu.memory_space<smem>>) -> (i32, i32) {
    %c0_i32 = arith.constant 0 : i32
    %c0_i32_0 = arith.constant 0 : i32
    return %arg0, %c0_i32 : i32, i32
  }
  func.func @transform_1(%arg0: i32, %arg1: i32, %arg2: memref<5xi32, #tpu.memory_space<smem>>) -> (i32, i32, i32) {
    %c2_i32 = arith.constant 2 : i32
    %c0_i32 = arith.constant 0 : i32
    %0 = arith.cmpi eq, %c2_i32, %c0_i32 : i32
    %c1_i32 = arith.constant 1 : i32
    %1 = arith.select %0, %c1_i32, %c2_i32 : i32
    %2 = arith.remsi %arg0, %1 : i32
    %c0_i32_0 = arith.constant 0 : i32
    %3 = arith.cmpi ne, %2, %c0_i32_0 : i32
    %c0_i32_1 = arith.constant 0 : i32
    %4 = arith.cmpi slt, %2, %c0_i32_1 : i32
    %c0_i32_2 = arith.constant 0 : i32
    %5 = arith.cmpi slt, %1, %c0_i32_2 : i32
    %6 = arith.xori %4, %5 : i1
    %7 = arith.andi %6, %3 : i1
    %8 = arith.addi %2, %1 : i32
    %9 = arith.select %7, %8, %2 : i32
    %c0_i32_3 = arith.constant 0 : i32
    %10 = arith.cmpi eq, %9, %c0_i32_3 : i32
    %c0_i32_4 = arith.constant 0 : i32
    %11 = arith.subi %c0_i32_4, %arg1 : i32
    %12 = arith.select %10, %arg1, %11 : i32
    %13 = arith.index_cast %arg0 : i32 to index
    %14 = memref.load %arg2[%13] : memref<5xi32, #tpu.memory_space<smem>>
    %c0_i32_5 = arith.constant 0 : i32
    %c0_i32_6 = arith.constant 0 : i32
    return %14, %c0_i32_5, %12 : i32, i32, i32
  }
  func.func @transform_2(%arg0: i32, %arg1: i32, %arg2: memref<5xi32, #tpu.memory_space<smem>>) -> (i32, i32, i32) {
    %c2_i32 = arith.constant 2 : i32
    %c0_i32 = arith.constant 0 : i32
    %0 = arith.cmpi eq, %c2_i32, %c0_i32 : i32
    %c1_i32 = arith.constant 1 : i32
    %1 = arith.select %0, %c1_i32, %c2_i32 : i32
    %2 = arith.remsi %arg0, %1 : i32
    %c0_i32_0 = arith.constant 0 : i32
    %3 = arith.cmpi ne, %2, %c0_i32_0 : i32
    %c0_i32_1 = arith.constant 0 : i32
    %4 = arith.cmpi slt, %2, %c0_i32_1 : i32
    %c0_i32_2 = arith.constant 0 : i32
    %5 = arith.cmpi slt, %1, %c0_i32_2 : i32
    %6 = arith.xori %4, %5 : i1
    %7 = arith.andi %6, %3 : i1
    %8 = arith.addi %2, %1 : i32
    %9 = arith.select %7, %8, %2 : i32
    %c0_i32_3 = arith.constant 0 : i32
    %10 = arith.cmpi eq, %9, %c0_i32_3 : i32
    %c0_i32_4 = arith.constant 0 : i32
    %11 = arith.subi %c0_i32_4, %arg1 : i32
    %12 = arith.select %10, %arg1, %11 : i32
    %13 = arith.index_cast %arg0 : i32 to index
    %14 = memref.load %arg2[%13] : memref<5xi32, #tpu.memory_space<smem>>
    %c0_i32_5 = arith.constant 0 : i32
    %c0_i32_6 = arith.constant 0 : i32
    return %14, %12, %c0_i32_5 : i32, i32, i32
  }
  func.func @transform_3(%arg0: i32, %arg1: i32, %arg2: memref<5xi32, #tpu.memory_space<smem>>) -> (i32, i32) {
    %c0_i32 = arith.constant 0 : i32
    %c0_i32_0 = arith.constant 0 : i32
    return %arg0, %c0_i32 : i32, i32
  }
}

</mosaic_0001>

<bundles_post_ra>
// kernel: moe_forward.1
= control target key start
LH: loop header
LB: loop body
LE: loop exit
PB: predicated region body
PF: predicated region fallthrough
CT: control target
= control target key end

     0   :  { %s1885_s0 = inlined_call_operand.vmem [shape: s32[5], index: 0, kind: input, shape index: {}]   ;;  %s1886_s1 = inlined_call_operand.vmem [shape: bf16[640,32], index: 1, kind: input, shape index: {}]   ;;  %s1887_s2 = inlined_call_operand.vmem [shape: bf16[4,32,128], index: 2, kind: input, shape index: {}]   ;;  %s1888_s3 = inlined_call_operand.vmem [shape: bf16[4,64,32], index: 3, kind: input, shape index: {}]   ;;  %s1889_s4 = inlined_call_operand.vmem [shape: bf16[640,32], index: 4, kind: output, shape index: {}]  }
   0x1   :  { %s9_s17 = sshll.u32 %s1885_s0, 4  ;;  %s10_s17 = int_to_ptr.vmem [resolvable:$true] %s9_s17 }
   0x2   :  { %s1587_s18 = scalar_lea.vmem %s10_s17, 16  ;;  %p1592_p1 = scmp.lt.s32.totalorder %s10_s17, %s10_s17 }
   0x3   :  { %p1588_p0 = scmp.ne.s32.totalorder %s10_s17, %s1587_s18  ;;  %p1593_p2 = scmp.lt.s32.totalorder %s1587_s18, %s1587_s18 }
   0x5   :  { %p1594_p3 = por %p1593_p2, %p1592_p1 }
   0x7   :  { %p1595_p4 = pnand %p1594_p3, %p1588_p0 }
   0x9   :  { %1598 = shalt.err (!%p1595_p4)  }
   0xa   :  { %s1625_s19 = smov [#allocation4]  }
   0xb   :  { %12 = dma.vmem_to_smem %s10_s17, 16, %s1625_s19, [#allocation3] }
   0xc   :  { %1611 = dma.done.wait [#allocation3], 16 }
   0xd   :  { %1612 = vsyncadd [#allocation3], 4294967280 }
   0xe   :  { %14 = sfence }
   0xf   :  { %s1656_s20 = smov 0   ;;  %s1658_s21 = smov 0  }
  0x10   :  { %s1660_s22 = smov 0  }
  0x11 LB: > { %s32_s0 = sadd.s32 1, %s1619_s21  ;;  %p1319_p5 = scmp.ge.s32.totalorder %s1623_s22, 1  ;;  %s1623_s22 = sphi %s1660_s22, %s20_s22   ;;  %s1619_s21 = sphi %s1658_s21, %s1891_s21   ;;  %s1615_s20 = sphi %s1656_s20, %s1890_s20  }
  0x12   : > { %p34_p6 = scmp.ge.s32.totalorder %s32_s0, 5  ;;  %p317_p7 = scmp.lt.s32.totalorder %s1623_s22, 6 }
  0x14   : > { %s1893_s0 = smov (%p34_p6, %s32_s0), 0  ;;  %p318_p8 = pnand %p1319_p5, %p317_p7 }
  0x15   : > { %s411_s23 = sld [smem:[#allocation4 + %s1615_s20]] (!%p318_p8)  ;;  %s1320_s24 = sshll.u32 (!%p318_p8), %s1615_s20, 4  ;;  %vm489_vm0 = vcmask (!%p318_p8), 261120   ;;  %v1627_v27 = vmov (!%p318_p8), 0.0   ;;  %vm948_vm1 = vcmask (!%p318_p8), 523264   ;;  %vm1185_vm2 = vcmask (!%p318_p8), 257024  }
  0x16   : > { %321 = sbr.rel (%p318_p8) target bundleno = 632 (0x278), region = 32  ;;  %p391_p9 = scmp.lt.s32.totalorder (!%p318_p8), %s1320_s24, 79  ;;  %492 = vst.msk [vmem:[#allocation2 + $0x10] sm:$0xff] (!%p318_p8), %vm489_vm0, %v1627_v27  ;;  %490 = vst.msk [vmem:[#allocation2] sm:$0xff] (!%p318_p8), %vm489_vm0, %v1627_v27 }
  0x17   : > { %s451_s7 = sld [smem:[#allocation4 + %s1615_s20]] (!%p318_p8)  ;;  %s1626_s12 = smov (!%p318_p8), 64   ;;  %491 = vst.msk [vmem:[#allocation2 + $0x8] sm:$0xff] (!%p318_p8), %vm489_vm0, %v1627_v27  ;;  %493 = vst.msk [vmem:[#allocation2 + $0x18] sm:$0xff] (!%p318_p8), %vm489_vm0, %v1627_v27 }
  0x18   : > { %494 = vst.msk [vmem:[#allocation2 + $0x20] sm:$0xff] (!%p318_p8), %vm489_vm0, %v1627_v27  ;;  %495 = vst.msk [vmem:[#allocation2 + $0x28] sm:$0xff] (!%p318_p8), %vm489_vm0, %v1627_v27 }
  0x19   : > { %496 = vst.msk [vmem:[#allocation2 + $0x30] sm:$0xff] (!%p318_p8), %vm489_vm0, %v1627_v27  ;;  %497 = vst.msk [vmem:[#allocation2 + $0x38] sm:$0xff] (!%p318_p8), %vm489_vm0, %v1627_v27 }
  0x1a   : > { %498 = vst.msk [vmem:[#allocation2 + $0x40] sm:$0xff] (!%p318_p8), %vm489_vm0, %v1627_v27  ;;  %499 = vst.msk [vmem:[#allocation2 + $0x48] sm:$0xff] (!%p318_p8), %vm489_vm0, %v1627_v27 }
  0x1b   : > { %p412_p10 = scmp.lt.s32.totalorder (!%p318_p8), %s411_s23, 3  ;;  %500 = vst.msk [vmem:[#allocation2 + $0x50] sm:$0xff] (!%p318_p8), %vm489_vm0, %v1627_v27  ;;  %501 = vst.msk [vmem:[#allocation2 + $0x58] sm:$0xff] (!%p318_p8), %vm489_vm0, %v1627_v27 }
  0x1c   : > { %502 = vst.msk [vmem:[#allocation2 + $0x60] sm:$0xff] (!%p318_p8), %vm489_vm0, %v1627_v27  ;;  %503 = vst.msk [vmem:[#allocation2 + $0x68] sm:$0xff] (!%p318_p8), %vm489_vm0, %v1627_v27 }
  0x1d   : > { %s1895_s24 = smov (!%p391_p9, %s1320_s24), 79  ;;  %s1897_s23 = smov (!%p412_p10, %s411_s23), 3  ;;  %504 = vst.msk [vmem:[#allocation2 + $0x70] sm:$0xff] %vm489_vm0, %v1627_v27  ;;  %505 = vst.msk [vmem:[#allocation2 + $0x78] sm:$0xff] %vm489_vm0, %v1627_v27 }
  0x1e   : > { %s1321_s25 = sshll.u32 %s1895_s24, 2  ;;  %s1398_s29 = sshll.u32 %s1897_s23, 4 }
  0x1f   : > { %s394_s28 = scalar_lea.vmem %s1886_s1, %s1321_s25  ;;  %s419_s6 = scalar_lea.vmem %s1887_s2, %s1398_s29 }
  0x20   : > { %v1511_v0 = vld [vmem:[%s394_s28] sm:$0xff]   ;;  %v1510_v2 = vld [vmem:[%s419_s6 + $0x8] sm:$0xff]   ;;  %v1513_v4 = vld [vmem:[%s394_s28 + $0x10] sm:$0xff]   ;;  %p453_p11 = scmp.lt.s32.totalorder %s451_s7, 3  ;;  %s1830_s15 = scalar_lea.vmem %s1889_s4, %s1321_s25 }
  0x21   : > { %1442 = vmatprep.mubr.msk.bf16.mxu0 %vm489_vm0, %v1511_v0  ;;  %v1509_v1 = vld [vmem:[%s419_s6] sm:$0xff]   ;;  %v1512_v3 = vld [vmem:[%s394_s28 + $0x8] sm:$0xff]   ;;  %v1514_v5 = vld [vmem:[%s394_s28 + $0x18] sm:$0xff]  }
  0x22   : > { %1438 = vmatprep.subr.bf16.mxu0 %v1509_v1  ;;  %v1515_v6 = vld [vmem:[%s394_s28 + $0x20] sm:$0xff]   ;;  %v1516_v7 = vld [vmem:[%s394_s28 + $0x28] sm:$0xff]   ;;  %v1517_v8 = vld [vmem:[%s394_s28 + $0x30] sm:$0xff]   ;;  %s1899_s7 = smov (!%p453_p11, %s451_s7), 3 }
  0x23   : > { %1439 = vmatpush3.bf16.msra.mxu0 %v1509_v1  ;;  %v1518_v9 = vld [vmem:[%s394_s28 + $0x38] sm:$0xff]   ;;  %s1399_s8 = sshll.u32 %s1899_s7, 5 }
  0x24   : > { %1440 = vmatprep.subr.bf16.mxu0 %v1510_v2  ;;  %s460_s11 = scalar_lea.vmem %s1888_s3, %s1399_s8 }
  0x25   : > { %v1519_v10 = vld [vmem:[%s460_s11] sm:$0xff]   ;;  %v1520_v11 = vld [vmem:[%s460_s11 + $0x8] sm:$0xff]   ;;  %v1521_v12 = vld [vmem:[%s460_s11 + $0x10] sm:$0xff]  }
  0x26   : > { %1458 = vmatprep.subr.bf16.mxu1 %v1519_v10  ;;  %v1522_v13 = vld [vmem:[%s460_s11 + $0x18] sm:$0xff]  }
  0x27   : > { %1441 = vmatpush3.bf16.msra.mxu0 %v1510_v2  ;;  %1459 = vmatpush3.bf16.msra.mxu1 %v1519_v10 }
  0x28   : > { %1460 = vmatprep.subr.bf16.mxu1 %v1520_v11 }
  0x2a   : > { %1443 = vmatmul.mubr.msk.bf16.vlgmr.msra.gmra.mrb[0].mxu0 %vm489_vm0, %v1512_v3 }
  0x2b   : > { %1446 = vmatprep.mubr.msk.bf16.mxu0 %vm489_vm0, %v1513_v4  ;;  %1461 = vmatpush3.bf16.msra.mxu1 %v1520_v11 }
  0x2c   : > { %1462 = vmatprep.subr.bf16.mxu1 %v1521_v12 }
  0x2f   : > { %1463 = vmatpush3.bf16.msra.mxu1 %v1521_v12 }
  0x30   : > { %1464 = vmatprep.subr.bf16.mxu1 %v1522_v13 }
  0x32   : > { %1447 = vmatmul.mubr.msk.bf16.gmra.mrb[4].mxu0 %vm489_vm0, %v1514_v5 }
  0x33   : > { %1450 = vmatprep.mubr.msk.bf16.mxu0 %vm489_vm0, %v1515_v6  ;;  %1465 = vmatpush3.bf16.msra.mxu1 %v1522_v13 }
  0x3a   : > { %1451 = vmatmul.mubr.msk.bf16.gmra.mrb[8].mxu0 %vm489_vm0, %v1516_v7 }
  0x3b   : > { %1454 = vmatprep.mubr.msk.bf16.mxu0 %vm489_vm0, %v1517_v8 }
  0x42   : > { %1455 = vmatmul.mubr.msk.bf16.gmra.mrb[12].mxu0 %vm489_vm0, %v1518_v9 }
  0xfd   : > { %v1701_v14 = vpop.f32.mrb[0].mxu0 }
  0xfe   : > { %832 = vrot.lane.b32.xlu1 %v1701_v14, %s1626_s12  ;;  %v1705_v15 = vpop.f32.mrb[1].mxu0  ;;  %v1354_v31 = vmul.f32 -1.442695, %v1701_v14 }
  0xff   : > { %828 = vrot.lane.b32.xlu0 %v1705_v15, %s1626_s12  ;;  %v1709_v16 = vpop.f32.mrb[2].mxu0  ;;  %v1352_v32 = vmul.f32 -1.442695, %v1705_v15 }
 0x100   : > { %v1711_v17 = vpop.f32.mrb[3].mxu0  ;;  %1523 = vpow2.f32 %v1354_v31  ;;  %v1355_v33 = vmul.f32 -1.442695, %v1709_v16 }
 0x101   : > { %1525 = vpow2.f32 %v1352_v32  ;;  %v1353_v34 = vmul.f32 -1.442695, %v1711_v17 }
 0x102   : > { %834 = vrot.lane.b32.xlu1 %v1709_v16, %s1626_s12  ;;  %1527 = vpow2.f32 %v1355_v33 }
 0x103   : > { %830 = vrot.lane.b32.xlu0 %v1711_v17, %s1626_s12  ;;  %1529 = vpow2.f32 %v1353_v34 }
 0x105   : > { %v1717_v18 = vpop.f32.mrb[4].mxu0 }
 0x106   : > { %v1719_v19 = vpop.f32.mrb[5].mxu0  ;;  %v1358_v37 = vmul.f32 -1.442695, %v1717_v18 }
 0x107   : > { %836 = vrot.lane.b32.xlu0 %v1719_v19, %s1626_s12  ;;  %v1723_v20 = vpop.f32.mrb[6].mxu0  ;;  %v1356_v35 = vmul.f32 -1.442695, %v1719_v19 }
 0x108   : > { %v1725_v21 = vpop.f32.mrb[7].mxu0  ;;  %v1359_v40 = vmul.f32 -1.442695, %v1723_v20 }
 0x109   : > { %838 = vrot.lane.b32.xlu1 %v1725_v21, %s1626_s12  ;;  %v1357_v36 = vmul.f32 -1.442695, %v1725_v21  ;;  %1531 = vpow2.f32 %v1356_v35 }
 0x10a   : > { %v1524_v38 = vpop.eup %1523 }
 0x10b   : > { %840 = vrot.lane.b32.xlu0 %v1717_v18, %s1626_s12  ;;  %v1526_v39 = vpop.eup %1525  ;;  %1533 = vpow2.f32 %v1357_v36  ;;  %v750_v41 = vadd.f32 1.0, %v1524_v38 }
 0x10c   : > { %1535 = vpow2.f32 %v1358_v37  ;;  %v1528_v42 = vpop.eup %1527  ;;  %v748_v43 = vadd.f32 1.0, %v1526_v39 }
 0x10d   : > { %842 = vrot.lane.b32.xlu1 %v1723_v20, %s1626_s12  ;;  %v1733_v22 = vpop.f32.mrb[8].mxu0  ;;  %v1530_v44 = vpop.eup %1529  ;;  %1537 = vpow2.f32 %v1359_v40  ;;  %v751_v47 = vadd.f32 1.0, %v1528_v42 }
 0x10e   : > { %v1735_v23 = vpop.f32.mrb[9].mxu0  ;;  %1539 = vrcp.f32 %v750_v41  ;;  %v749_v48 = vadd.f32 1.0, %v1530_v44  ;;  %v1362_v50 = vmul.f32 -1.442695, %v1733_v22 }
 0x10f   : > { %844 = vrot.lane.b32.xlu0 %v1735_v23, %s1626_s12  ;;  %v1739_v24 = vpop.f32.mrb[10].mxu0  ;;  %v1360_v45 = vmul.f32 -1.442695, %v1735_v23  ;;  %1541 = vrcp.f32 %v748_v43 }
 0x110   : > { %v1741_v25 = vpop.f32.mrb[11].mxu0  ;;  %v1363_v51 = vmul.f32 -1.442695, %v1739_v24 }
 0x111   : > { %846 = vrot.lane.b32.xlu1 %v1741_v25, %s1626_s12  ;;  %v1361_v46 = vmul.f32 -1.442695, %v1741_v25  ;;  %1543 = vpow2.f32 %v1360_v45 }
 0x113   : > { %848 = vrot.lane.b32.xlu0 %v1733_v22, %s1626_s12  ;;  %v1532_v49 = vpop.eup %1531  ;;  %1545 = vpow2.f32 %v1361_v46 }
 0x114   : > { %1547 = vrcp.f32 %v751_v47  ;;  %v752_v53 = vadd.f32 1.0, %v1532_v49 }
 0x115   : > { %850 = vrot.lane.b32.xlu1 %v1739_v24, %s1626_s12  ;;  %v1749_v26 = vpop.f32.mrb[12].mxu0  ;;  %v1534_v52 = vpop.eup %1533  ;;  %1549 = vrcp.f32 %v749_v48 }
 0x116   : > { %v1767_v28 = vpop.f32.mrb[13].mxu0  ;;  %v1536_v54 = vpop.eup %1535  ;;  %1551 = vpow2.f32 %v1362_v50  ;;  %v753_v57 = vadd.f32 1.0, %v1534_v52  ;;  %v1366_v61 = vmul.f32 -1.442695, %v1749_v26 }
 0x117   : > { %852 = vrot.lane.b32.xlu0 %v1767_v28, %s1626_s12  ;;  %v1771_v29 = vpop.f32.mrb[14].mxu0  ;;  %v1364_v55 = vmul.f32 -1.442695, %v1767_v28  ;;  %1553 = vpow2.f32 %v1363_v51  ;;  %v1538_v58 = vpop.eup %1537  ;;  %v754_v59 = vadd.f32 1.0, %v1536_v54 }
 0x118   : > { %v1773_v30 = vpop.f32.mrb[15].mxu0  ;;  %1555 = vrcp.f32 %v752_v53  ;;  %v1540_v60 = vpop.eup %1539  ;;  %v1367_v63 = vmul.f32 -1.442695, %v1771_v29  ;;  %v755_v1 = vadd.f32 1.0, %v1538_v58 }
 0x119   : > { %854 = vrot.lane.b32.xlu1 %v1773_v30, %s1626_s12  ;;  %v1365_v56 = vmul.f32 -1.442695, %v1773_v30  ;;  %1557 = vpow2.f32 %v1364_v55  ;;  %v1542_v62 = vpop.eup %1541  ;;  %v798_v11 = vmul.f32 %v1540_v60, %v1701_v14 }
 0x11a   : > { %v796_v31 = vmul.f32 %v1542_v62, %v1705_v15 }
 0x11b   : > { %856 = vrot.lane.b32.xlu0 %v1749_v26, %s1626_s12  ;;  %1559 = vpow2.f32 %v1365_v56  ;;  %v1544_v0 = vpop.eup %1543 }
 0x11c   : > { %1561 = vrcp.f32 %v753_v57  ;;  %v756_v5 = vadd.f32 1.0, %v1544_v0 }
 0x11d   : > { %858 = vrot.lane.b32.xlu1 %v1771_v29, %s1626_s12  ;;  %v1546_v2 = vpop.eup %1545  ;;  %1563 = vrcp.f32 %v754_v59 }
 0x11e   : > { %v1548_v3 = vpop.eup %1547  ;;  %1565 = vpow2.f32 %v1366_v61  ;;  %v757_v8 = vadd.f32 1.0, %v1546_v2 }
 0x11f   : > { %v1550_v4 = vpop.eup %1549  ;;  %1567 = vpow2.f32 %v1367_v63  ;;  %v799_v12 = vmul.f32 %v1548_v3, %v1709_v16 }
 0x120   : > { %v1552_v7 = vpop.eup %1551  ;;  %1569 = vrcp.f32 %v755_v1  ;;  %v797_v33 = vmul.f32 %v1550_v4, %v1711_v17 }
 0x121   : > { %v1554_v10 = vpop.eup %1553  ;;  %v758_v27 = vadd.f32 1.0, %v1552_v7  ;;  %1571 = vrcp.f32 %v756_v5 }
 0x122   : > { %v1556_v13 = vpop.eup %1555  ;;  %v759_v35 = vadd.f32 1.0, %v1554_v10  ;;  %1573 = vrcp.f32 %v757_v8 }
 0x123   : > { %v1558_v34 = vpop.eup %1557  ;;  %1575 = vrcp.f32 %v758_v27  ;;  %v800_v47 = vmul.f32 %v1556_v13, %v1719_v19 }
 0x124   : > { %v760_v43 = vadd.f32 1.0, %v1558_v34  ;;  %1577 = vrcp.f32 %v759_v35 }
 0x125   : > { %v1560_v39 = vpop.eup %1559 }
 0x126   : > { %v1562_v14 = vpop.eup %1561  ;;  %v761_v45 = vadd.f32 1.0, %v1560_v39  ;;  %1579 = vrcp.f32 %v760_v43 }
 0x127   : > { %v1564_v16 = vpop.eup %1563  ;;  %v801_v48 = vmul.f32 %v1562_v14, %v1725_v21  ;;  %v892_v14 = vld [vmem:[#allocation2] sm:$0xff] }
 0x128   : > { %v1566_v15 = vpop.eup %1565  ;;  %1581 = vrcp.f32 %v761_v45  ;;  %v802_v58 = vmul.f32 %v1564_v16, %v1717_v18  ;;  %v895_v16 = vld [vmem:[#allocation2 + $0x18] sm:$0xff] }
 0x129   : > { %v1568_v46 = vpop.eup %1567  ;;  %v762_v51 = vadd.f32 1.0, %v1566_v15  ;;  %v893_v15 = vld [vmem:[#allocation2 + $0x8] sm:$0xff] }
 0x12a   : > { %v1570_v49 = vpop.eup %1569  ;;  %v763_v54 = vadd.f32 1.0, %v1568_v46 }
 0x12b   : > { %v1572_v56 = vpop.eup %1571  ;;  %v803_v19 = vmul.f32 %v1570_v49, %v1723_v20  ;;  %1583 = vrcp.f32 %v762_v51 }
 0x12c   : > { %v1574_v59 = vpop.eup %1573  ;;  %1585 = vrcp.f32 %v763_v54  ;;  %v804_v1 = vmul.f32 %v1572_v56, %v1735_v23  ;;  %v897_v54 = vld [vmem:[#allocation2 + $0x28] sm:$0xff] }
 0x12d   : > { %v1576_v63 = vpop.eup %1575  ;;  %v805_v2 = vmul.f32 %v1574_v59, %v1741_v25 }
 0x12e   : > { %v1578_v3 = vpop.eup %1577  ;;  %v806_v8 = vmul.f32 %v1576_v63, %v1733_v22 }
 0x170   : > { %v833_v6 = vpop.permute.xlu1 %832 }
 0x171   : > { %v829_v9 = vpop.permute.xlu0 %828  ;;  %v878_v36 = vmul.f32 %v833_v6, %v798_v11  ;;  %v1580_v6 = vpop.eup %1579 }
 0x172   : > { %v876_v40 = vmul.f32 %v829_v9, %v796_v31  ;;  %v807_v9 = vmul.f32 %v1578_v3, %v1739_v24  ;;  %v1582_v10 = vpop.eup %1581 }
 0x173   : > { %v1584_v25 = vpop.eup %1583  ;;  %v809_v27 = vmul.f32 %v1582_v10, %v1773_v30 }
 0x174   : > { %v835_v32 = vpop.permute.xlu1 %834 }
 0x175   : > { %v879_v37 = vmul.f32 %v835_v32, %v799_v12  ;;  %v831_v38 = vpop.permute.xlu0 %830  ;;  %v808_v32 = vmul.f32 %v1580_v6, %v1767_v28  ;;  %v894_v28 = vld [vmem:[#allocation2 + $0x10] sm:$0xff] }
 0x176   : > { %v877_v41 = vmul.f32 %v831_v38, %v797_v33  ;;  %v1586_v33 = vpop.eup %1585 }
 0x177   : > { %v909_v42 = vpack.c.bf16 %v879_v37, %v878_v36  ;;  %v810_v37 = vmul.f32 %v1584_v25, %v1749_v26  ;;  %v811_v38 = vmul.f32 %v1586_v33, %v1771_v29  ;;  %v906_v33 = vld [vmem:[#allocation2 + $0x70] sm:$0xff] }
 0x178   : > { %v908_v44 = vpack.c.bf16 %v877_v41, %v876_v40 }
 0x179   : > { %v837_v17 = vpop.permute.xlu0 %836 }
 0x17a   : > { %1466 = vmatprep.mubr.msk.bf16.mxu1 %vm948_vm1, %v908_v44  ;;  %v880_v52 = vmul.f32 %v837_v17, %v800_v47  ;;  %v898_v47 = vld [vmem:[#allocation2 + $0x30] sm:$0xff] }
 0x17b   : > { %1467 = vmatmul.mubr.msk.bf16.vlgmr.msra.gmra.mrb[0].mxu1 %vm948_vm1, %v909_v42  ;;  %v839_v50 = vpop.permute.xlu1 %838 }
 0x17c   : > { %v881_v53 = vmul.f32 %v839_v50, %v801_v48  ;;  %v896_v48 = vld [vmem:[#allocation2 + $0x20] sm:$0xff]  ;;  %v899_v50 = vld [vmem:[#allocation2 + $0x38] sm:$0xff] }
 0x17d   : > { %v841_v55 = vpop.permute.xlu0 %840 }
 0x17e   : > { %v910_v57 = vpack.c.bf16 %v881_v53, %v880_v52  ;;  %v882_v21 = vmul.f32 %v841_v55, %v802_v58 }
 0x17f   : > { %v843_v60 = vpop.permute.xlu1 %842 }
 0x180   : > { %v883_v61 = vmul.f32 %v843_v60, %v803_v19  ;;  %1470 = vmatprep.mubr.msk.bf16.mxu1 %vm948_vm1, %v910_v57 }
 0x181   : > { %v845_v62 = vpop.permute.xlu0 %844 }
 0x182   : > { %v911_v0 = vpack.c.bf16 %v883_v61, %v882_v21  ;;  %v884_v18 = vmul.f32 %v845_v62, %v804_v1  ;;  %v902_v1 = vld [vmem:[#allocation2 + $0x50] sm:$0xff] }
 0x183   : > { %v847_v4 = vpop.permute.xlu1 %846 }
 0x184   : > { %v885_v5 = vmul.f32 %v847_v4, %v805_v2  ;;  %1471 = vmatmul.mubr.msk.bf16.gmra.mrb[4].mxu1 %vm948_vm1, %v911_v0  ;;  %v900_v2 = vld [vmem:[#allocation2 + $0x40] sm:$0xff]  ;;  %v903_v4 = vld [vmem:[#allocation2 + $0x58] sm:$0xff] }
 0x185   : > { %v849_v20 = vpop.permute.xlu0 %848 }
 0x186   : > { %v912_v7 = vpack.c.bf16 %v885_v5, %v884_v18  ;;  %v886_v12 = vmul.f32 %v849_v20, %v806_v8  ;;  %v901_v20 = vld [vmem:[#allocation2 + $0x48] sm:$0xff] }
 0x187   : > { %v851_v11 = vpop.permute.xlu1 %850 }
 0x188   : > { %v887_v13 = vmul.f32 %v851_v11, %v807_v9  ;;  %1474 = vmatprep.mubr.msk.bf16.mxu1 %vm948_vm1, %v912_v7 }
 0x189   : > { %v853_v23 = vpop.permute.xlu0 %852 }
 0x18a   : > { %v913_v31 = vpack.c.bf16 %v887_v13, %v886_v12  ;;  %v888_v35 = vmul.f32 %v853_v23, %v808_v32 }
 0x18b   : > { %v855_v34 = vpop.permute.xlu1 %854 }
 0x18c   : > { %v889_v36 = vmul.f32 %v855_v34, %v809_v27  ;;  %1475 = vmatmul.mubr.msk.bf16.gmra.mrb[8].mxu1 %vm948_vm1, %v913_v31  ;;  %v904_v34 = vld [vmem:[#allocation2 + $0x60] sm:$0xff] }
 0x18d   : > { %v857_v22 = vpop.permute.xlu0 %856 }
 0x18e   : > { %v914_v24 = vpack.c.bf16 %v889_v36, %v888_v35  ;;  %v890_v40 = vmul.f32 %v857_v22, %v810_v37  ;;  %v907_v36 = vld [vmem:[#allocation2 + $0x78] sm:$0xff]  ;;  %v905_v37 = vld [vmem:[#allocation2 + $0x68] sm:$0xff] }
 0x18f   : > { %v859_v39 = vpop.permute.xlu1 %858 }
 0x190   : > { %v891_v41 = vmul.f32 %v859_v39, %v811_v38  ;;  %1478 = vmatprep.mubr.msk.bf16.mxu1 %vm948_vm1, %v914_v24 }
 0x192   : > { %v915_v30 = vpack.c.bf16 %v891_v41, %v890_v40 }
 0x194   : > { %1479 = vmatmul.mubr.msk.bf16.gmra.mrb[12].mxu1 %vm948_vm1, %v915_v30 }
 0x24e   : > { %v1468_v42 = vpop.f32.mrb[0].mxu1 }
 0x24f   : > { %v1072_v43 = vadd.f32 %v1468_v42, %v894_v28  ;;  %v1007_v44 = vpop.f32.mrb[1].mxu1 }
 0x250   : > { %v1070_v45 = vadd.f32 %v1007_v44, %v892_v14  ;;  %v1469_v26 = vpop.f32.mrb[2].mxu1 }
 0x251   : > { %1088 = vst.msk [vmem:[#allocation2 + $0x10] sm:$0xff] %vm489_vm0, %v1072_v43  ;;  %v1073_v29 = vadd.f32 %v1469_v26, %v895_v16  ;;  %v1010_v17 = vpop.f32.mrb[3].mxu1 }
 0x252   : > { %1086 = vst.msk [vmem:[#allocation2] sm:$0xff] %vm489_vm0, %v1070_v45  ;;  %v1071_v46 = vadd.f32 %v1010_v17, %v893_v15 }
 0x253   : > { %1089 = vst.msk [vmem:[#allocation2 + $0x18] sm:$0xff] %vm489_vm0, %v1073_v29 }
 0x254   : > { %1087 = vst.msk [vmem:[#allocation2 + $0x8] sm:$0xff] %vm489_vm0, %v1071_v46 }
 0x257   : > { %v1472_v49 = vpop.f32.mrb[4].mxu1 }
 0x258   : > { %v1107_v51 = vld [vmem:[#allocation2 + $0x10] sm:$0xff]  ;;  %v1076_v52 = vadd.f32 %v1472_v49, %v898_v47  ;;  %v1023_v53 = vpop.f32.mrb[5].mxu1 }
 0x259   : > { %v1402_v55 = vpack.c.bf16 %v1107_v51, %v1107_v51  ;;  %v1105_v56 = vld [vmem:[#allocation2] sm:$0xff]  ;;  %v1074_v57 = vadd.f32 %v1023_v53, %v896_v48  ;;  %v1473_v58 = vpop.f32.mrb[6].mxu1 }
 0x25a   : > { %v1400_v19 = vpack.c.bf16 %v1105_v56, %v1105_v56  ;;  %v1108_v59 = vld [vmem:[#allocation2 + $0x18] sm:$0xff]  ;;  %1092 = vst.msk [vmem:[#allocation2 + $0x30] sm:$0xff] %vm489_vm0, %v1076_v52  ;;  %v1077_v60 = vadd.f32 %v1473_v58, %v899_v50  ;;  %v1026_v21 = vpop.f32.mrb[7].mxu1 }
 0x25b   : > { %1188 = vst.msk [vmem:[%s1830_s15 + $0x8] sm:$0xf] %vm1185_vm2, %v1402_v55  ;;  %v1403_v61 = vpack.c.bf16 %v1108_v59, %v1108_v59  ;;  %v1106_v62 = vld [vmem:[#allocation2 + $0x8] sm:$0xff]  ;;  %v1075_v63 = vadd.f32 %v1026_v21, %v897_v54 }
 0x25c   : > { %1090 = vst.msk [vmem:[#allocation2 + $0x20] sm:$0xff] %vm489_vm0, %v1074_v57  ;;  %v1401_v0 = vpack.c.bf16 %v1106_v62, %v1106_v62  ;;  %1093 = vst.msk [vmem:[#allocation2 + $0x38] sm:$0xff] %vm489_vm0, %v1077_v60 }
 0x25d   : > { %1186 = vst.msk [vmem:[%s1830_s15] sm:$0xf] %vm1185_vm2, %v1400_v19  ;;  %1189 = vst.msk [vmem:[%s1830_s15 + $0xc] sm:$0xf] %vm1185_vm2, %v1403_v61 }
 0x25e   : > { %1091 = vst.msk [vmem:[#allocation2 + $0x28] sm:$0xff] %vm489_vm0, %v1075_v63 }
 0x25f   : > { %1187 = vst.msk [vmem:[%s1830_s15 + $0x4] sm:$0xf] %vm1185_vm2, %v1401_v0  ;;  %v1476_v3 = vpop.f32.mrb[8].mxu1 }
 0x260   : > { %v1080_v18 = vadd.f32 %v1476_v3, %v902_v1  ;;  %v1039_v5 = vpop.f32.mrb[9].mxu1 }
 0x261   : > { %v1111_v6 = vld [vmem:[#allocation2 + $0x30] sm:$0xff]  ;;  %v1078_v7 = vadd.f32 %v1039_v5, %v900_v2  ;;  %v1477_v8 = vpop.f32.mrb[10].mxu1 }
 0x262   : > { %v1406_v9 = vpack.c.bf16 %v1111_v6, %v1111_v6  ;;  %1096 = vst.msk [vmem:[#allocation2 + $0x50] sm:$0xff] %vm489_vm0, %v1080_v18  ;;  %v1081_v11 = vadd.f32 %v1477_v8, %v903_v4  ;;  %v1042_v12 = vpop.f32.mrb[11].mxu1 }
 0x263   : > { %v1109_v10 = vld [vmem:[#allocation2 + $0x20] sm:$0xff]  ;;  %v1112_v23 = vld [vmem:[#allocation2 + $0x38] sm:$0xff]  ;;  %1094 = vst.msk [vmem:[#allocation2 + $0x40] sm:$0xff] %vm489_vm0, %v1078_v7  ;;  %v1079_v25 = vadd.f32 %v1042_v12, %v901_v20 }
 0x264   : > { %v1404_v13 = vpack.c.bf16 %v1109_v10, %v1109_v10  ;;  %1192 = vst.msk [vmem:[%s1830_s15 + $0x18] sm:$0xf] %vm1185_vm2, %v1406_v9  ;;  %v1407_v27 = vpack.c.bf16 %v1112_v23, %v1112_v23 }
 0x265   : > { %v1110_v31 = vld [vmem:[#allocation2 + $0x28] sm:$0xff]  ;;  %1097 = vst.msk [vmem:[#allocation2 + $0x58] sm:$0xff] %vm489_vm0, %v1081_v11  ;;  %1095 = vst.msk [vmem:[#allocation2 + $0x48] sm:$0xff] %vm489_vm0, %v1079_v25 }
 0x266   : > { %1190 = vst.msk [vmem:[%s1830_s15 + $0x10] sm:$0xf] %vm1185_vm2, %v1404_v13  ;;  %v1405_v32 = vpack.c.bf16 %v1110_v31, %v1110_v31  ;;  %1193 = vst.msk [vmem:[%s1830_s15 + $0x1c] sm:$0xf] %vm1185_vm2, %v1407_v27 }
 0x267   : > { %v1480_v35 = vpop.f32.mrb[12].mxu1 }
 0x268   : > { %1191 = vst.msk [vmem:[%s1830_s15 + $0x14] sm:$0xf] %vm1185_vm2, %v1405_v32  ;;  %v1084_v22 = vadd.f32 %v1480_v35, %v906_v33  ;;  %v1055_v24 = vpop.f32.mrb[13].mxu1 }
 0x269   : > { %v1115_v38 = vld [vmem:[#allocation2 + $0x50] sm:$0xff]  ;;  %v1082_v39 = vadd.f32 %v1055_v24, %v904_v34  ;;  %v1481_v40 = vpop.f32.mrb[14].mxu1 }
 0x26a   : > { %v1410_v41 = vpack.c.bf16 %v1115_v38, %v1115_v38  ;;  %v1113_v30 = vld [vmem:[#allocation2 + $0x40] sm:$0xff]  ;;  %1100 = vst.msk [vmem:[#allocation2 + $0x70] sm:$0xff] %vm489_vm0, %v1084_v22  ;;  %v1085_v28 = vadd.f32 %v1481_v40, %v907_v36  ;;  %v1058_v14 = vpop.f32.mrb[15].mxu1 }
 0x26b   : > { %v1408_v42 = vpack.c.bf16 %v1113_v30, %v1113_v30  ;;  %1098 = vst.msk [vmem:[#allocation2 + $0x60] sm:$0xff] %vm489_vm0, %v1082_v39  ;;  %v1083_v43 = vadd.f32 %v1058_v14, %v905_v37 }
 0x26c   : > { %v1116_v16 = vld [vmem:[#allocation2 + $0x58] sm:$0xff]  ;;  %1196 = vst.msk [vmem:[%s1830_s15 + $0x28] sm:$0xf] %vm1185_vm2, %v1410_v41  ;;  %v1114_v15 = vld [vmem:[#allocation2 + $0x48] sm:$0xff] }
 0x26d   : > { %v1411_v44 = vpack.c.bf16 %v1116_v16, %v1116_v16  ;;  %1101 = vst.msk [vmem:[#allocation2 + $0x78] sm:$0xff] %vm489_vm0, %v1085_v28  ;;  %v1409_v45 = vpack.c.bf16 %v1114_v15, %v1114_v15  ;;  %1099 = vst.msk [vmem:[#allocation2 + $0x68] sm:$0xff] %vm489_vm0, %v1083_v43 }
 0x26e   : > { %1194 = vst.msk [vmem:[%s1830_s15 + $0x20] sm:$0xf] %vm1185_vm2, %v1408_v42 }
 0x26f   : > { %1197 = vst.msk [vmem:[%s1830_s15 + $0x2c] sm:$0xf] %vm1185_vm2, %v1411_v44  ;;  %1195 = vst.msk [vmem:[%s1830_s15 + $0x24] sm:$0xf] %vm1185_vm2, %v1409_v45 }
 0x271   : > { %v1119_v26 = vld [vmem:[#allocation2 + $0x70] sm:$0xff] }
 0x272   : > { %v1414_v29 = vpack.c.bf16 %v1119_v26, %v1119_v26  ;;  %v1117_v17 = vld [vmem:[#allocation2 + $0x60] sm:$0xff] }
 0x273   : > { %v1412_v46 = vpack.c.bf16 %v1117_v17, %v1117_v17 }
 0x274   : > { %v1120_v47 = vld [vmem:[#allocation2 + $0x78] sm:$0xff]  ;;  %1200 = vst.msk [vmem:[%s1830_s15 + $0x38] sm:$0xf] %vm1185_vm2, %v1414_v29  ;;  %v1118_v49 = vld [vmem:[#allocation2 + $0x68] sm:$0xff] }
 0x275   : > { %v1415_v48 = vpack.c.bf16 %v1120_v47, %v1120_v47  ;;  %1198 = vst.msk [vmem:[%s1830_s15 + $0x30] sm:$0xf] %vm1185_vm2, %v1412_v46  ;;  %v1413_v50 = vpack.c.bf16 %v1118_v49, %v1118_v49 }
 0x277   : > { %1201 = vst.msk [vmem:[%s1830_s15 + $0x3c] sm:$0xf] %vm1185_vm2, %v1415_v48  ;;  %1199 = vst.msk [vmem:[%s1830_s15 + $0x34] sm:$0xf] %vm1185_vm2, %v1413_v50 }
 0x278 PF: > { %s20_s22 = sadd.s32 1, %s1623_s22   ;;  %s1890_s20 = smov %s1619_s21 }
 0x279   : > { %p17_p12 = scmp.ge.s32.totalorder %s20_s22, 7   ;;  %s1891_s21 = smov %s1893_s0 }
 0x27b   :  { %19 = sbr.rel (!%p17_p12) target bundleno = 17 (0x11), region = 76 }

</bundles_post_ra>
